<compile_context>
chip_gen: v5e
topology: v5e:2x2
jax: 0.10.0
libtpu: 0.0.40
codegen_flags: <defaults>
</compile_context>

<pallas_src>
import math
from functools import partial

import jax
import jax.numpy as jnp
from jax.experimental import pallas as pl
from jax.experimental.pallas import tpu as pltpu

EPS = 1e-6


def _round_up(x, m):
    return (x + m - 1) // m * m


def _vmem_limit_bytes():
    """Generation-aware scoped-VMEM limit (~75% of physical, 48 MiB fallback)."""
    try:
        info = pltpu.get_tpu_info()
        cap = int(getattr(info, "vmem_capacity_bytes", 0))
        if cap > 0:
            return cap * 3 // 4           # v7x ~48 MiB, v5e/v6e ~96 MiB
    except Exception:
        pass
    return 48 * 1024 * 1024


def choose_tiles(n_nodes, n_edges, tn=None, te=None):
    """Tile plan.  Defaults give a ~20 MiB double-buffered working set, which
    fits every generation (v7x's 64 MiB VMEM included)."""
    if te is None:
        te = min(4096, _round_up(n_edges, 128))
    if tn is None:
        tn = min(1024, _round_up(n_nodes, 16))
        # Keep >= 2 node tiles when possible so the "parallel" N axis can
        # shard across both TensorCores on v7x (no-op on v5e/v6e).
        if n_nodes > 16 and _round_up(n_nodes, tn) // tn < 2:
            tn = max(16, _round_up((n_nodes + 1) // 2, 16))
    assert te % 128 == 0 and tn % 16 == 0
    return tn, te


def prepare_mtgt(mtgt, *, tn, te):
    """Pad + bf16-cast the fixed target-incidence matrix ONCE (graph is fixed);
    reuse the result across forward calls instead of rebuilding it per call."""
    n, e = mtgt.shape
    n_pad, e_pad = _round_up(n, tn), _round_up(e, te)
    return jnp.pad(mtgt, ((0, n_pad - n), (0, e_pad - e))).astype(jnp.bfloat16)


def _edge_kernel(h_ref, w_ref, b_ref, f_ref, *, n_edges, te, mask_rows):
    # z = [a_norm | y | 0-pad]; the global max of a (and bw) is baked into
    # lane 0 of the bias, so exp(z[:, 0]) is already the normalized weight.
    z = (jnp.dot(h_ref[...], w_ref[...], preferred_element_type=jnp.float32)
         + b_ref[...])                                            # [te, OPAD] f32
    a_exp = jnp.exp(z[:, 0:1])                                    # [te, 1]
    if mask_rows:
        # Zero padded edge rows so the spmm operand stays finite; the padded
        # Mtgt columns are zero, so they contribute nothing anyway.
        row = (jax.lax.broadcasted_iota(jnp.int32, (z.shape[0], 1), 0)
               + pl.program_id(0) * te)
        a_exp = jnp.where(row < n_edges, a_exp, 0.0)
    # Padded lanes of z are exactly 0 (zero weights & bias) -> relu keeps them
    # 0; only the attention lane needs the constant-1 override.
    col = jax.lax.broadcasted_iota(jnp.int32, z.shape, 1)
    sel = jnp.where(col == 0, 1.0, jnp.maximum(z, 0.0))
    f_ref[...] = (sel * a_exp).astype(f_ref.dtype)                # [a_exp | y*a_exp | 0]


def _spmm_kernel(m_ref, f_ref, o_ref, acc_ref, *, eps):
    e = pl.program_id(1)

    @pl.when(e == 0)
    def _():
        acc_ref[...] = jnp.zeros_like(acc_ref)

    # One Mtgt pass produces both spmm outputs: col 0 = a_sum, cols 1.. = num.
    acc_ref[...] += jnp.dot(m_ref[...], f_ref[...],
                            preferred_element_type=jnp.float32)

    @pl.when(e == pl.num_programs(1) - 1)
    def _():
        inv = pl.reciprocal(acc_ref[:, 0:1] + eps, approx=False)
        o_ref[...] = (acc_ref[...] * inv).astype(o_ref.dtype)


@partial(jax.jit, static_argnames=("tn", "te"))
def fixed_graph_convolution(x, src, tgt, mtgt_b, wf_t, bf, ww_t, bw, *, tn, te):
    """x:[N,F] f32, src/tgt:[E] i32, mtgt_b = prepare_mtgt(mtgt) (padded bf16),
    wf_t:[2F,O], bf:[1,O], ww_t:[2F,1], bw:[1,1].  Returns [N,O] f32."""
    N, F = x.shape
    E = src.shape[0]
    O = wf_t.shape[1]
    OPAD = _round_up(O + 1, 128)            # lane-dense: [a | y(0..O-1) | 0-pad]
    N_pad, E_pad = _round_up(N, tn), _round_up(E, te)
    assert mtgt_b.shape == (N_pad, E_pad) and mtgt_b.dtype == jnp.bfloat16

    # Data-dependent row gather stays in plain JAX (one pass over x per edge).
    h = jnp.concatenate([jnp.take(x, src, axis=0),
                         jnp.take(x, tgt, axis=0)], axis=1)       # [E, 2F] f32
    # Global softmax max over the REAL edges: one cheap [E,2F]@[2F,1] matvec.
    a_max = jnp.max(h @ ww_t + bw)

    # Fused, lane-padded weights/bias: lane 0 = attention score (with -max
    # baked in), lanes 1..O = feature linear, remaining lanes contribute 0.
    w_fused = (jnp.zeros((2 * F, OPAD), jnp.float32)
               .at[:, 0:1].set(ww_t).at[:, 1:O + 1].set(wf_t)).astype(jnp.bfloat16)
    b_fused = (jnp.zeros((1, OPAD), jnp.float32)
               .at[:, 0:1].set(bw - a_max).at[:, 1:O + 1].set(bf))

    h_b = jnp.pad(h, ((0, E_pad - E), (0, 0))).astype(jnp.bfloat16)

    vmem_limit = _vmem_limit_bytes()

    # --- Edge prepass: fused[E, OPAD] = [a_exp | relu(y)*a_exp | 0] (bf16) ---
    fused = pl.pallas_call(
        partial(_edge_kernel, n_edges=E, te=te, mask_rows=E_pad != E),
        out_shape=jax.ShapeDtypeStruct((E_pad, OPAD), jnp.bfloat16),
        grid_spec=pltpu.PrefetchScalarGridSpec(
            num_scalar_prefetch=0,
            grid=(E_pad // te,),
            in_specs=[
                pl.BlockSpec((te, 2 * F), lambda e: (e, 0)),      # h rows
                pl.BlockSpec((2 * F, OPAD), lambda e: (0, 0)),    # fused weights
                pl.BlockSpec((1, OPAD), lambda e: (0, 0)),        # fused bias
            ],
            out_specs=pl.BlockSpec((te, OPAD), lambda e: (e, 0)),
        ),
        compiler_params=pltpu.CompilerParams(
            dimension_semantics=("parallel",),
            vmem_limit_bytes=vmem_limit,
        ),
    )(h_b, w_fused, b_fused)

    # --- Hot loop: pure Mtgt @ fused reduction over the E axis ---------------
    out = pl.pallas_call(
        partial(_spmm_kernel, eps=EPS),
        out_shape=jax.ShapeDtypeStruct((N_pad, OPAD), jnp.float32),
        grid_spec=pltpu.PrefetchScalarGridSpec(
            num_scalar_prefetch=0,
            grid=(N_pad // tn, E_pad // te),
            in_specs=[
                pl.BlockSpec((tn, te), lambda i, e: (i, e)),      # Mtgt tile
                pl.BlockSpec((te, OPAD), lambda i, e: (e, 0)),    # fused tile
            ],
            out_specs=pl.BlockSpec((tn, OPAD), lambda i, e: (i, 0)),
            scratch_shapes=[pltpu.VMEM((tn, OPAD), jnp.float32)],
        ),
        compiler_params=pltpu.CompilerParams(
            dimension_semantics=("parallel", "arbitrary"),
            vmem_limit_bytes=vmem_limit,
        ),
    )(mtgt_b, fused)

    # Strip node padding, the a_sum lane, and the lane padding.
    return out[:N, 1:O + 1]


def ref_forward_f32(x, src, tgt, mtgt, wf_t, bf, ww_t, bw):
    """Pure f32 reference matching the PyTorch module exactly."""
    h = jnp.concatenate([x[src], x[tgt]], axis=1)
    y = jax.nn.relu(h @ wf_t + bf)
    a = h @ ww_t + bw
    a_exp = jnp.exp(a - jnp.max(a, axis=0, keepdims=True))
    a_sum = mtgt @ a_exp + EPS
    return (mtgt @ (y * a_exp)) / a_sum


def ref_forward_bf16(x, src, tgt, mtgt, wf_t, bf, ww_t, bw):
    """Reference applying the same bf16 matmul casts / fused layout as the kernel."""
    h = jnp.concatenate([x[src], x[tgt]], axis=1)
    a_max = jnp.max(h @ ww_t + bw)
    w = jnp.concatenate([ww_t, wf_t], axis=1).astype(jnp.bfloat16)
    b = jnp.concatenate([bw - a_max, bf], axis=1)
    z = jnp.dot(h.astype(jnp.bfloat16), w, preferred_element_type=jnp.float32) + b
    a_exp = jnp.exp(z[:, 0:1])
    y = jnp.maximum(z[:, 1:], 0.0)
    fused = jnp.concatenate([a_exp, y * a_exp], axis=1).astype(jnp.bfloat16)
    res = jnp.dot(mtgt.astype(jnp.bfloat16), fused, preferred_element_type=jnp.float32)
    return res[:, 1:] / (res[:, 0:1] + EPS)


if __name__ == "__main__":
    in_features = 16
    out_features = 32
    n_nodes = 32
    deg = 8

    # Deterministic edge list: node i has edges to (i+k) % n_nodes, k=0..deg-1.
    src_list, tgt_list = [], []
    for i in range(n_nodes):
        for k in range(deg):
            src_list.append(i)
            tgt_list.append((i + k) % n_nodes)
    src = jnp.array(src_list, dtype=jnp.int32)   # [E]
    tgt = jnp.array(tgt_list, dtype=jnp.int32)   # [E] ; E = 256

    # Dense target-incidence matrix Mtgt[n, e] = 1 if tgt[e] == n.
    mtgt = (tgt[None, :] == jnp.arange(n_nodes)[:, None]).astype(jnp.float32)

    key = jax.random.PRNGKey(0)
    kx, kwf, kbf, kww, kbw = jax.random.split(key, 5)
    x = jax.random.normal(kx, (n_nodes, in_features), dtype=jnp.float32)

    # Parameter init matching the module (xavier_uniform weights, Linear-style
    # uniform biases), stored transposed for the kernel.
    fan_in = 2 * in_features
    bound_f = math.sqrt(6.0 / (fan_in + out_features))
    wf_t = jax.random.uniform(kwf, (fan_in, out_features), jnp.float32,
                              minval=-bound_f, maxval=bound_f)
    b_bound = 1.0 / math.sqrt(fan_in)
    bf = jax.random.uniform(kbf, (1, out_features), jnp.float32,
                            minval=-b_bound, maxval=b_bound)
    bound_w = math.sqrt(6.0 / (fan_in + 1))
    ww_t = jax.random.uniform(kww, (fan_in, 1), jnp.float32,
                              minval=-bound_w, maxval=bound_w)
    bw = jax.random.uniform(kbw, (1, 1), jnp.float32,
                            minval=-b_bound, maxval=b_bound)

    # Small tiles force a (2 N-tiles x 2 E-tiles) grid so the cross-tile
    # accumulation path of the spmm kernel is exercised.
    tn, te = choose_tiles(n_nodes, int(src.shape[0]), tn=16, te=128)
    mtgt_b = prepare_mtgt(mtgt, tn=tn, te=te)    # fixed graph: prepared ONCE

    out = fixed_graph_convolution(x, src, tgt, mtgt_b, wf_t, bf, ww_t, bw,
                                  tn=tn, te=te)
    out = jax.block_until_ready(out)

    ref_bf = ref_forward_bf16(x, src, tgt, mtgt, wf_t, bf, ww_t, bw)
    ref_32 = ref_forward_f32(x, src, tgt, mtgt, wf_t, bf, ww_t, bw)

    assert out.shape == (n_nodes, out_features)
    # Tight check vs a reference with the same bf16 matmul casts.
    assert jnp.allclose(out, ref_bf, atol=1e-2, rtol=1e-2), \
        "mismatch vs bf16-matmul reference"
    # Loose sanity check vs the exact f32 module semantics (bf16 MXU noise).
    assert jnp.allclose(out, ref_32, atol=1e-1, rtol=1e-1), \
        "mismatch vs f32 reference"

    print("KERNEL_OK")
</pallas_src>

<mosaic_0001>
module attributes {stable_mosaic.version = 11 : i64} {
  func.func @_edge_kernel(%arg0: i32, %arg1: memref<128x32xbf16, #tpu.memory_space<vmem>>, %arg2: memref<32x128xbf16, #tpu.memory_space<vmem>>, %arg3: memref<1x128xf32, #tpu.memory_space<vmem>>, %arg4: memref<128x128xbf16, #tpu.memory_space<vmem>>) attributes {dimension_semantics = [#tpu.dimension_semantics<parallel>], iteration_bounds = array<i64: 2>, scalar_prefetch = 0 : i64, scratch_operands = 0 : i64, tpu.core_type = #tpu.core_type<tc>, window_params = [{transform_indices = @transform_0, window_bounds = array<i64: 128, 32>}, {pipeline_mode = #tpu.pipeline_mode<synchronous>, transform_indices = @transform_1, window_bounds = array<i64: 32, 128>}, {pipeline_mode = #tpu.pipeline_mode<synchronous>, transform_indices = @transform_2, window_bounds = array<i64: 1, 128>}, {transform_indices = @transform_3, window_bounds = array<i64: 128, 128>}]} {
    %c0 = arith.constant 0 : index
    %c0_0 = arith.constant 0 : index
    %0 = vector.load %arg1[%c0, %c0_0] : memref<128x32xbf16, #tpu.memory_space<vmem>>, vector<128x32xbf16>
    %c0_1 = arith.constant 0 : index
    %c0_2 = arith.constant 0 : index
    %1 = vector.load %arg2[%c0_1, %c0_2] : memref<32x128xbf16, #tpu.memory_space<vmem>>, vector<32x128xbf16>
    %cst = arith.constant dense<0.000000e+00> : vector<128x128xf32>
    %2 = tpu.matmul %0, %1, %cst {dimension_numbers = #tpu.dot_dimension_numbers<[1], [0], [0], [1], [0, 0, 1, 1], [], []>} : vector<128x32xbf16>, vector<32x128xbf16>, vector<128x128xf32> -> vector<128x128xf32>
    %c0_3 = arith.constant 0 : index
    %c0_4 = arith.constant 0 : index
    %3 = vector.load %arg3[%c0_3, %c0_4] : memref<1x128xf32, #tpu.memory_space<vmem>>, vector<1x128xf32>
    %4 = vector.broadcast %3 : vector<1x128xf32> to vector<128x128xf32>
    %5 = arith.addf %2, %4 : vector<128x128xf32>
    %6 = vector.extract_strided_slice %5 {offsets = [0, 0], sizes = [128, 1], strides = [1, 1]} : vector<128x128xf32> to vector<128x1xf32>
    %7 = math.exp %6 : vector<128x1xf32>
    %8 = tpu.iota {dimensions = array<i32: 1>} : vector<128x128xi32>
    %c0_i32 = arith.constant 0 : i32
    %9 = vector.broadcast %c0_i32 : i32 to vector<128x128xi32>
    %10 = arith.cmpi eq, %8, %9 : vector<128x128xi32>
    %cst_5 = arith.constant 0.000000e+00 : f32
    %11 = vector.broadcast %cst_5 : f32 to vector<128x128xf32>
    %12 = arith.maximumf %5, %11 : vector<128x128xf32>
    %cst_6 = arith.constant 1.000000e+00 : f32
    %13 = vector.broadcast %cst_6 : f32 to vector<128x128xf32>
    %14 = arith.select %10, %13, %12 : vector<128x128xi1>, vector<128x128xf32>
    %15 = vector.broadcast %7 : vector<128x1xf32> to vector<128x128xf32>
    %16 = arith.mulf %14, %15 : vector<128x128xf32>
    %17 = arith.truncf %16 : vector<128x128xf32> to vector<128x128xbf16>
    %c0_7 = arith.constant 0 : index
    %c0_8 = arith.constant 0 : index
    %18 = vector.load %arg4[%c0_7, %c0_8] : memref<128x128xbf16, #tpu.memory_space<vmem>>, vector<128x128xbf16>
    tpu.vector_store %arg4[%c0_7, %c0_8], %17 {strides = array<i32>} : memref<128x128xbf16, #tpu.memory_space<vmem>>, vector<128x128xbf16>,
    return
  }
  func.func @transform_0(%arg0: i32) -> (i32, i32) {
    %c0_i32 = arith.constant 0 : i32
    %c0_i32_0 = arith.constant 0 : i32
    return %arg0, %c0_i32 : i32, i32
  }
  func.func @transform_1(%arg0: i32) -> (i32, i32) {
    %c0_i32 = arith.constant 0 : i32
    %c0_i32_0 = arith.constant 0 : i32
    %c0_i32_1 = arith.constant 0 : i32
    return %c0_i32, %c0_i32_0 : i32, i32
  }
  func.func @transform_2(%arg0: i32) -> (i32, i32) {
    %c0_i32 = arith.constant 0 : i32
    %c0_i32_0 = arith.constant 0 : i32
    %c0_i32_1 = arith.constant 0 : i32
    return %c0_i32, %c0_i32_0 : i32, i32
  }
  func.func @transform_3(%arg0: i32) -> (i32, i32) {
    %c0_i32 = arith.constant 0 : i32
    %c0_i32_0 = arith.constant 0 : i32
    return %arg0, %c0_i32 : i32, i32
  }
}

module attributes {stable_mosaic.version = 11 : i64} {
  func.func @_spmm_kernel(%arg0: i32, %arg1: i32, %arg2: memref<16x128xbf16, #tpu.memory_space<vmem>>, %arg3: memref<128x128xbf16, #tpu.memory_space<vmem>>, %arg4: memref<16x128xf32, #tpu.memory_space<vmem>>, %arg5: memref<16x128xf32, #tpu.memory_space<vmem>>) attributes {dimension_semantics = [#tpu.dimension_semantics<parallel>, #tpu.dimension_semantics<arbitrary>], iteration_bounds = array<i64: 2, 2>, scalar_prefetch = 0 : i64, scratch_operands = 1 : i64, tpu.core_type = #tpu.core_type<tc>, window_params = [{transform_indices = @transform_0, window_bounds = array<i64: 16, 128>}, {transform_indices = @transform_1, window_bounds = array<i64: 128, 128>}, {transform_indices = @transform_2, window_bounds = array<i64: 16, 128>}]} {
    %c0_i32 = arith.constant 0 : i32
    %0 = arith.cmpi eq, %arg1, %c0_i32 : i32
    %1 = arith.extui %0 : i1 to i32
    %c0_i32_0 = arith.constant 0 : i32
    %2 = arith.cmpi ne, %1, %c0_i32_0 : i32
    scf.if %2 {
      %cst_9 = arith.constant 0.000000e+00 : f32
      %12 = vector.broadcast %cst_9 : f32 to vector<16x128xf32>
      %c0_10 = arith.constant 0 : index
      %c0_11 = arith.constant 0 : index
      %13 = vector.load %arg5[%c0_10, %c0_11] : memref<16x128xf32, #tpu.memory_space<vmem>>, vector<16x128xf32>
      tpu.vector_store %arg5[%c0_10, %c0_11], %12 {strides = array<i32>} : memref<16x128xf32, #tpu.memory_space<vmem>>, vector<16x128xf32>,
    } else {
    }
    %c0 = arith.constant 0 : index
    %c0_1 = arith.constant 0 : index
    %3 = vector.load %arg5[%c0, %c0_1] : memref<16x128xf32, #tpu.memory_space<vmem>>, vector<16x128xf32>
    %c0_2 = arith.constant 0 : index
    %c0_3 = arith.constant 0 : index
    %4 = vector.load %arg2[%c0_2, %c0_3] : memref<16x128xbf16, #tpu.memory_space<vmem>>, vector<16x128xbf16>
    %c0_4 = arith.constant 0 : index
    %c0_5 = arith.constant 0 : index
    %5 = vector.load %arg3[%c0_4, %c0_5] : memref<128x128xbf16, #tpu.memory_space<vmem>>, vector<128x128xbf16>
    %cst = arith.constant dense<0.000000e+00> : vector<16x128xf32>
    %6 = tpu.matmul %4, %5, %cst {dimension_numbers = #tpu.dot_dimension_numbers<[1], [0], [0], [1], [0, 0, 1, 1], [], []>} : vector<16x128xbf16>, vector<128x128xbf16>, vector<16x128xf32> -> vector<16x128xf32>
    %7 = arith.addf %3, %6 : vector<16x128xf32>
    %c0_6 = arith.constant 0 : index
    %c0_7 = arith.constant 0 : index
    %8 = vector.load %arg5[%c0_6, %c0_7] : memref<16x128xf32, #tpu.memory_space<vmem>>, vector<16x128xf32>
    tpu.vector_store %arg5[%c0_6, %c0_7], %7 {strides = array<i32>} : memref<16x128xf32, #tpu.memory_space<vmem>>, vector<16x128xf32>,
    %c1_i32 = arith.constant 1 : i32
    %9 = arith.cmpi eq, %arg1, %c1_i32 : i32
    %10 = arith.extui %9 : i1 to i32
    %c0_i32_8 = arith.constant 0 : i32
    %11 = arith.cmpi ne, %10, %c0_i32_8 : i32
    scf.if %11 {
      %c0_9 = arith.constant 0 : index
      %c0_10 = arith.constant 0 : index
      %12 = vector.load %arg5[%c0_9, %c0_10] : memref<16x128xf32, #tpu.memory_space<vmem>>, vector<16x1xf32>
      %cst_11 = arith.constant 9.99999997E-7 : f32
      %13 = vector.broadcast %cst_11 : f32 to vector<16x1xf32>
      %14 = arith.addf %12, %13 : vector<16x1xf32>
      %15 = tpu.reciprocal %14 : vector<16x1xf32> -> vector<16x1xf32>
      %c0_12 = arith.constant 0 : index
      %c0_13 = arith.constant 0 : index
      %16 = vector.load %arg5[%c0_12, %c0_13] : memref<16x128xf32, #tpu.memory_space<vmem>>, vector<16x128xf32>
      %17 = vector.broadcast %15 : vector<16x1xf32> to vector<16x128xf32>
      %18 = arith.mulf %16, %17 : vector<16x128xf32>
      %c0_14 = arith.constant 0 : index
      %c0_15 = arith.constant 0 : index
      %19 = vector.load %arg4[%c0_14, %c0_15] : memref<16x128xf32, #tpu.memory_space<vmem>>, vector<16x128xf32>
      tpu.vector_store %arg4[%c0_14, %c0_15], %18 {strides = array<i32>} : memref<16x128xf32, #tpu.memory_space<vmem>>, vector<16x128xf32>,
    } else {
    }
    return
  }
  func.func @transform_0(%arg0: i32, %arg1: i32) -> (i32, i32) {
    %c0_i32 = arith.constant 0 : i32
    return %arg0, %arg1 : i32, i32
  }
  func.func @transform_1(%arg0: i32, %arg1: i32) -> (i32, i32) {
    %c0_i32 = arith.constant 0 : i32
    %c0_i32_0 = arith.constant 0 : i32
    return %arg1, %c0_i32 : i32, i32
  }
  func.func @transform_2(%arg0: i32, %arg1: i32) -> (i32, i32) {
    %c0_i32 = arith.constant 0 : i32
    %c0_i32_0 = arith.constant 0 : i32
    return %arg0, %c0_i32 : i32, i32
  }
}

</mosaic_0001>

<bundles_post_ra>
// kernel: fixed_graph_convolution.3
= control target key start
LH: loop header
LB: loop body
LE: loop exit
PB: predicated region body
PF: predicated region fallthrough
CT: control target
= control target key end

     0   :  { %s668_s9 = smov 0   ;;  %s670_s10 = smov 0   ;;  %s769_s0 = inlined_call_operand.vmem [shape: bf16[32,256], index: 0, kind: input, shape index: {}]   ;;  %s770_s1 = inlined_call_operand.vmem [shape: bf16[256,128], index: 1, kind: input, shape index: {}]   ;;  %s771_s2 = inlined_call_operand.vmem [shape: f32[32,128], index: 2, kind: output, shape index: {}]  }
   0x1   :  { %s672_s11 = smov 0   ;;  %s674_s12 = smov 0  }
   0x2   :  { %s676_s13 = smov 0   ;;  %s678_s14 = smov 0  }
   0x3   :  { %s680_s15 = smov 0  }
   0x4 LB: > { %s21_s16 = sadd.s32 1, %s641_s13  ;;  %s24_s17 = sadd.s32 1, %s645_s14  ;;  %s649_s15 = sphi %s680_s15, %s12_s15   ;;  %s645_s14 = sphi %s678_s14, %s777_s14   ;;  %s641_s13 = sphi %s676_s13, %s776_s13   ;;  %s637_s12 = sphi %s674_s12, %s775_s12   ;;  %s633_s11 = sphi %s672_s11, %s774_s11   ;;  %s629_s10 = sphi %s670_s10, %s773_s10   ;;  %s625_s9 = sphi %s668_s9, %s772_s9  }
   0x5   : > { %p22_p0 = scmp.ge.s32.totalorder %s21_s16, 2  ;;  %p40_p1 = scmp.ne.s32.totalorder %s629_s10, %s625_s9 }
   0x6   : > { %p41_p2 = scmp.eq.s32.totalorder %s649_s15, 0  ;;  %s33_s21 = sadd.s32 1, %s629_s10 }
   0x7   : > { %s779_s16 = smov (%p22_p0, %s21_s16), 0  ;;  %s781_s17 = smov (!%p22_p0, %s24_s17), %s645_s14 }
   0x8   : > { %p42_p3 = por %p41_p2, %p40_p1  ;;  %p26_p4 = scmp.ge.s32.totalorder %s781_s17, 2 }
   0x9   : > { %s29_s18 = ssub.s32 %s641_s13, %s779_s16  ;;  %p471_p6 = scmp.ge.s32.totalorder %s649_s15, 4 }
   0xa   : > { %s783_s17 = smov (%p26_p4, %s781_s17), 0 }
   0xb   : > { %s28_s19 = ssub.s32 %s645_s14, %s783_s17  ;;  %118 = sbr.rel (%p471_p6) target bundleno = 24 (0x18), region = 16 }
   0xc   : > { %s30_s20 = sor.u32 %s29_s18, %s28_s19 }
   0xd   : > { %p31_p5 = scmp.eq.s32.totalorder %s30_s20, 0 }
   0xf   : > { %s719_s22 = scalar_select %p31_p5, %s629_s10, %s33_s21  }
  0x10   : > { %121 = sbr.rel (!%p42_p3) target bundleno = 24 (0x18), region = 20  ;;  %s123_s23 = sand.u32 (%p42_p3), 1, %s629_s10  }
  0x11   : > { %s522_s24 = sshll.u32 (%p42_p3), %s645_s14, 2  ;;  %s472_s25 = sshll.u32 (%p42_p3), %s123_s23, 3 }
  0x12   : > { %s128_s26 = sadd.s32 (%p42_p3), %s641_s13, %s522_s24  ;;  %s125_s3 = scalar_lea.vmem (%p42_p3), [#allocation3], %s472_s25 }
  0x13   : > { %s475_s27 = sshll.u32 (%p42_p3), %s128_s26, 2 }
  0x14   : > { %s130_s30 = scalar_lea.vmem (%p42_p3), %s769_s0, %s475_s27 }
  0x15   : > { %v147_v0 = vld [vmem:[%s130_s30] sm:$0xf]  ;;  %v149_v1 = vld [vmem:[%s130_s30 + $0x8] sm:$0xf] }
  0x16   : > { %148 = vst [vmem:[%s125_s3] sm:$0xf] %v147_v0 }
  0x17   : > { %150 = vst [vmem:[%s125_s3 + $0x4] sm:$0xf] %v149_v1 }
  0x18 PF: > { %p476_p7 = scmp.ge.s32.totalorder %s649_s15, 1  ;;  %p186_p8 = scmp.lt.s32.totalorder %s649_s15, 5 }
  0x1a   : > { %p187_p9 = pnand %p476_p7, %p186_p8 }
  0x1b   : > { %s193_s4 = sand.u32 (!%p187_p9), 1, %s625_s9   ;;  %s478_s5 = sshll.u32 (!%p187_p9), %s633_s11, 4 }
  0x1c   : > { %190 = sbr.rel (%p187_p9) target bundleno = 359 (0x167), region = 65  ;;  %s732_s6 = sshll.u32 (!%p187_p9), %s193_s4, 3 }
  0x1d   : > { %p221_p10 = scmp.lt.s32.totalorder (!%p187_p9), %s478_s5, 31  ;;  %s480_s7 = sshll.u32 (!%p187_p9), %s637_s12, 1 }
  0x1e   : > { %p227_p11 = scmp.lt.s32.totalorder (!%p187_p9), %s480_s7, 3  ;;  %s195_s9 = scalar_lea.vmem (!%p187_p9), [#allocation3], %s732_s6 }
  0x1f   : > { %p482_p12 = scmp.ne.s32.totalorder (!%p187_p9), %s633_s11, 0 }
  0x21   : > { %s785_s5 = smov (!%p221_p10, %s478_s5), 31  ;;  %s787_s7 = smov (!%p227_p11, %s480_s7), 3 }
  0x22   : > { %s479_s8 = sshll.u32 %s785_s5, 2  ;;  %s481_s21 = sshll.u32 %s787_s7, 3 }
  0x23   : > { %s224_s20 = scalar_lea.vmem %s770_s1, %s479_s8  ;;  %s741_s25 = scalar_lea.vmem %s771_s2, %s481_s21 }
  0x24   : > { %235 = sbr.rel (%p482_p12) target bundleno = 44 (0x2c), region = 73 }
  0x29   : > { %v651_v2 = vmov 0.0  }
  0x2a   : > { %236 = vst [vmem:[#allocation2] sm:$0xff] %v651_v2 }
  0x2b   : > { %237 = vst [vmem:[#allocation2 + $0x8] sm:$0xff] %v651_v2 }
  0x2c PF: > { %v531_v3 = vld [vmem:[%s224_s20 + $0x38] sm:$0xff]  ;;  %v530_v4 = vld [vmem:[%s224_s20 + $0x30] sm:$0xff]  ;;  %v529_v5 = vld [vmem:[%s224_s20 + $0x28] sm:$0xff]  ;;  %p519_p13 = scmp.ne.s32.totalorder %s633_s11, 1 }
  0x2d   : > { %312 = vmatpush.bf16.msra.mxu0 %v531_v3  ;;  %v528_v6 = vld [vmem:[%s224_s20 + $0x20] sm:$0xff]  ;;  %v527_v7 = vld [vmem:[%s224_s20 + $0x18] sm:$0xff]  ;;  %v526_v8 = vld [vmem:[%s224_s20 + $0x10] sm:$0xff] }
  0x2e   : > { %v525_v9 = vld [vmem:[%s224_s20 + $0x8] sm:$0xff]  ;;  %v524_v10 = vld [vmem:[%s224_s20] sm:$0xff]  ;;  %v523_v11 = vld [vmem:[%s195_s9] sm:$0xff] }
  0x31   : > { %313 = vmatpush.bf16.msra.mxu0 %v530_v4  ;;  %v238_v12 = vld [vmem:[#allocation2] sm:$0xff] }
  0x32   : > { %v239_v15 = vld [vmem:[#allocation2 + $0x8] sm:$0xff] }
  0x35   : > { %314 = vmatpush.bf16.msra.mxu0 %v529_v5 }
  0x39   : > { %315 = vmatpush.bf16.msra.mxu0 %v528_v6 }
  0x3d   : > { %316 = vmatpush.bf16.msra.mxu0 %v527_v7 }
  0x41   : > { %317 = vmatpush.bf16.msra.mxu0 %v526_v8 }
  0x45   : > { %318 = vmatpush.bf16.msra.mxu0 %v525_v9 }
  0x49   : > { %319 = vmatpush.bf16.msra.mxu0 %v524_v10 }
  0x4c   : > { %320 = vmatmul.bf16.vlgmr.msra.gmra.mxu0 %v523_v11 }
  0xc9   : > { %v321_v13 = vpop.f32.mrf.mxu0 }
  0xca   : > { %v326_v14 = vadd.f32 %v321_v13, %v238_v12 }
  0xcc   : > { %328 = vst [vmem:[#allocation2] sm:$0xff] %v326_v14 }
  0xd0   : > { %333 = sbr.rel (%p519_p13) target bundleno = 359 (0x167), region = 77 }
  0xd1   : > { %v323_v16 = vpop.f32.mrf.mxu0 }
  0xd2   : > { %v327_v17 = vadd.f32 %v323_v16, %v239_v15 }
  0xd4   : > { %329 = vst [vmem:[#allocation2 + $0x8] sm:$0xff] %v327_v17 }
  0xd5   : > { %v334_v18 = vld [vmem:[#allocation2] sm:$0xff]  ;;  %v652_v20 = vmov 0  }
  0xd6   : > { %590 = vset.pattern.permute.xlu0 %v652_v20  ;;  %v336_v21 = vadd.f32 1e-06, %v334_v18 }
  0xd8   : > { %591 = vrcp.f32 %v336_v21  ;;  %v349_v26 = vand.u32 2147483648, %v336_v21  ;;  %vm343_vm0 = vweird.f32 %v336_v21  ;;  %v347_v29 = vand.u32 2147483647, %v336_v21 }
  0xda   : > { %v350_v32 = vor.u32 1.1754944e-38, %v349_v26  ;;  %vm348_vm3 = vcmp.eq.f32.partialorder %v347_v29, 8.507059e+37 }
  0xdb   : > { %v335_v19 = vld [vmem:[#allocation2 + $0x8] sm:$0xff] }
  0xdc   : > { %v337_v22 = vadd.f32 1e-06, %v335_v19 }
  0xde   : > { %593 = vrcp.f32 %v337_v22  ;;  %v592_v23 = vpop.eup %591  ;;  %vm357_vm4 = vweird.f32 %v337_v22  ;;  %v363_v35 = vand.u32 2147483648, %v337_v22  ;;  %v361_v38 = vand.u32 2147483647, %v337_v22 }
  0xdf   : > { %v339_v25 = vmul.f32 %v592_v23, %v336_v21  ;;  %vm344_vm1 = vweird.f32 %v592_v23 }
  0xe0   : > { %vm345_vm2 = vmor %vm343_vm0, %vm344_vm1  ;;  %v364_v40 = vor.u32 1.1754944e-38, %v363_v35  ;;  %vm362_vm7 = vcmp.eq.f32.partialorder %v361_v38, 8.507059e+37 }
  0xe1   : > { %v340_v28 = vsub.f32 1.0, %v339_v25 }
  0xe3   : > { %v341_v31 = vmul.f32 %v592_v23, %v340_v28 }
  0xe4   : > { %v594_v24 = vpop.eup %593 }
  0xe5   : > { %v353_v27 = vmul.f32 %v594_v24, %v337_v22  ;;  %v342_v34 = vadd.f32 %v592_v23, %v341_v31  ;;  %vm358_vm5 = vweird.f32 %v594_v24 }
  0xe6   : > { %vm359_vm6 = vmor %vm357_vm4, %vm358_vm5 }
  0xe7   : > { %v354_v30 = vsub.f32 1.0, %v353_v27  ;;  %v346_v36 = vsel %vm345_vm2, %v592_v23, %v342_v34 }
  0xe8   : > { %v351_v39 = vsel %vm348_vm3, %v350_v32, %v346_v36 }
  0xe9   : > { %v355_v33 = vmul.f32 %v594_v24, %v354_v30  ;;  %368 = vperm.xlu0 %590, %v351_v39  }
  0xeb   : > { %v356_v37 = vadd.f32 %v594_v24, %v355_v33 }
  0xed   : > { %v360_v41 = vsel %vm359_vm6, %v594_v24, %v356_v37 }
  0xee   : > { %v365_v42 = vsel %vm362_vm7, %v364_v40, %v360_v41 }
  0xf1   : > { %373 = vperm.xlu0 %590, %v365_v42  }
 0x15b   : > { %v369_v43 = vpop.permute.xlu0 %368 }
 0x15c   : > { %v376_v44 = vmul.f32 %v369_v43, %v334_v18 }
 0x15e   : > { %378 = vst [vmem:[%s741_s25] sm:$0xff] %v376_v44 }
 0x163   : > { %v374_v45 = vpop.permute.xlu0 %373 }
 0x164   : > { %v377_v46 = vmul.f32 %v374_v45, %v335_v19 }
 0x166   : > { %379 = vst [vmem:[%s741_s25 + $0x8] sm:$0xff] %v377_v46 }
 0x167 PF: > { %s12_s15 = sadd.s32 1, %s649_s15   ;;  %s772_s9 = smov %s629_s10 }
 0x168   : > { %p9_p0 = scmp.ge.s32.totalorder %s12_s15, 6   ;;  %s773_s10 = smov %s719_s22 }
 0x169   : > { %s774_s11 = smov %s641_s13  ;;  %s775_s12 = smov %s645_s14 }
 0x16a   : > { %s776_s13 = smov %s779_s16  ;;  %s777_s14 = smov %s783_s17 }
 0x16b   :  { %11 = sbr.rel (!%p9_p0) target bundleno = 4 (0x4), region = 115 }

// kernel: fixed_graph_convolution.2
= control target key start
LH: loop header
LB: loop body
LE: loop exit
PB: predicated region body
PF: predicated region fallthrough
CT: control target
= control target key end

     0   :  { %s772_s12 = smov 0   ;;  %s943_s0 = inlined_call_operand.vmem [shape: bf16[256,32], index: 0, kind: input, shape index: {}]   ;;  %s944_s1 = inlined_call_operand.vmem [shape: bf16[32,128], index: 1, kind: input, shape index: {}]   ;;  %s945_s2 = inlined_call_operand.vmem [shape: f32[1,128], index: 2, kind: input, shape index: {}]   ;;  %s946_s3 = inlined_call_operand.vmem [shape: bf16[256,128], index: 3, kind: output, shape index: {}]  }
   0x1 LB: > { %s576_s13 = sadd.s32 4294967295, %s749_s12   ;;  %p580_p0 = scmp.ge.s32.totalorder %s749_s12, 1  ;;  %s749_s12 = sphi %s772_s12, %s13_s12  }
   0x2   : > { %p138_p1 = scmp.lt.s32.totalorder %s749_s12, 3 }
   0x4   : > { %p139_p2 = pnand %p580_p0, %p138_p1 }
   0x5   : > { %s581_s16 = sshll.u32 (!%p139_p2), %s576_s13, 4 }
   0x6   : > { %142 = sbr.rel (%p139_p2) target bundleno = 324 (0x144), region = 32  ;;  %p163_p3 = scmp.lt.s32.totalorder (!%p139_p2), %s581_s16, 31 }
   0xb   : > { %v644_v0 = vld [vmem:[%s944_s1 + $0x8] sm:$0xff]  ;;  %v643_v1 = vld [vmem:[%s944_s1] sm:$0xff]  ;;  %s948_s16 = smov (!%p163_p3, %s581_s16), 31  ;;  %vm251_vm0 = vcmask 261120   ;;  %v751_v10 = vmov 0  }
   0xc   : > { %282 = vmatpush.bf16.msra.mxu0 %v644_v0  ;;  %692 = vmatpush.bf16.msra.mxu1 %v644_v0  ;;  %s582_s19 = sshll.u32 %s948_s16, 2  ;;  %v805_v11 = vld [vmem:[%s945_s2] ss:$0 sm:$0xff] }
   0xd   : > { %693 = vmatpush.bf16.msra.mxu2 %v644_v0  ;;  %694 = vmatpush.bf16.msra.mxu3 %v644_v0  ;;  %s166_s22 = scalar_lea.vmem %s943_s0, %s582_s19  ;;  %s885_s27 = scalar_lea.vmem %s946_s3, %s582_s19 }
   0xe   : > { %v635_v2 = vld [vmem:[%s166_s22] sm:$0xff]  ;;  %v637_v3 = vld [vmem:[%s166_s22 + $0x10] sm:$0xff]  ;;  %v636_v6 = vld [vmem:[%s166_s22 + $0x8] sm:$0xff]  ;;  %708 = vset.pattern.permute.xlu2 %v751_v10  ;;  %707 = vset.pattern.permute.xlu0 %v751_v10 }
   0xf   : > { %v639_v4 = vld [vmem:[%s166_s22 + $0x20] sm:$0xff]  ;;  %v641_v5 = vld [vmem:[%s166_s22 + $0x30] sm:$0xff]  ;;  %v638_v7 = vld [vmem:[%s166_s22 + $0x18] sm:$0xff]  ;;  %709 = vset.pattern.permute.xlu1 %v751_v10 }
  0x10   : > { %283 = vmatpush.bf16.msra.mxu0 %v643_v1  ;;  %695 = vmatpush.bf16.msra.mxu1 %v643_v1  ;;  %v640_v8 = vld [vmem:[%s166_s22 + $0x28] sm:$0xff]  ;;  %v642_v9 = vld [vmem:[%s166_s22 + $0x38] sm:$0xff] }
  0x11   : > { %696 = vmatpush.bf16.msra.mxu2 %v643_v1  ;;  %697 = vmatpush.bf16.msra.mxu3 %v643_v1 }
  0x13   : > { %625 = vmatmul.msk.bf16.vlgmr.msra.gmra.mxu0 %vm251_vm0, %v635_v2  ;;  %627 = vmatmul.msk.bf16.vlgmr.msra.gmra.mxu1 %vm251_vm0, %v637_v3 }
  0x14   : > { %629 = vmatmul.msk.bf16.vlgmr.msra.gmra.mxu2 %vm251_vm0, %v639_v4  ;;  %631 = vmatmul.msk.bf16.vlgmr.msra.gmra.mxu3 %vm251_vm0, %v641_v5 }
  0x23   : > { %626 = vmatmul.msk.bf16.gmra.mxu0 %vm251_vm0, %v636_v6  ;;  %628 = vmatmul.msk.bf16.gmra.mxu1 %vm251_vm0, %v638_v7 }
  0x24   : > { %630 = vmatmul.msk.bf16.gmra.mxu2 %vm251_vm0, %v640_v8  ;;  %632 = vmatmul.msk.bf16.gmra.mxu3 %vm251_vm0, %v642_v9 }
  0x90   : > { %v285_v12 = vpop.f32.mrf.mxu0  ;;  %v295_v13 = vpop.f32.mrf.mxu1 }
  0x91   : > { %v808_v14 = vadd.f32 %v805_v11, %v285_v12  ;;  %v811_v15 = vadd.f32 %v805_v11, %v295_v13 }
  0x93   : > { %v325_v16 = vmul.f32 1.442695, %v808_v14  ;;  %v333_v17 = vmul.f32 1.442695, %v811_v15 }
  0x95   : > { %711 = vpow2.f32 %v325_v16  ;;  %v357_v16 = vlaneseq }
  0x96   : > { %713 = vpow2.f32 %v333_v17 }
  0x97   : > { %v305_v18 = vpop.f32.mrf.mxu2  ;;  %v315_v19 = vpop.f32.mrf.mxu3 }
  0x98   : > { %v816_v20 = vadd.f32 %v805_v11, %v305_v18  ;;  %v287_v21 = vpop.f32.mrf.mxu0  ;;  %v819_v22 = vadd.f32 %v805_v11, %v315_v19  ;;  %v297_v23 = vpop.f32.mrf.mxu1  ;;  %v871_v18 = vand.u32 127, %v357_v16 }
  0x99   : > { %v824_v28 = vadd.f32 %v805_v11, %v297_v23  ;;  %v827_v29 = vadd.f32 %v805_v11, %v287_v21 }
  0x9a   : > { %v341_v24 = vmul.f32 1.442695, %v816_v20  ;;  %v349_v25 = vmul.f32 1.442695, %v819_v22  ;;  %vm359_vm1 = vcmp.eq.s32.totalorder %v871_v18, 0 }
  0x9b   : > { %v712_v26 = vpop.eup %711  ;;  %v335_v33 = vmul.f32 1.442695, %v824_v28  ;;  %v327_v36 = vmul.f32 1.442695, %v827_v29  ;;  %v365_v19 = vmax.f32 %v824_v28, 0.0 }
  0x9c   : > { %v714_v27 = vpop.eup %713  ;;  %715 = vpow2.f32 %v341_v24  ;;  %394 = vperm.xlu0 %707, %v712_v26  }
  0x9d   : > { %414 = vperm.xlu2 %708, %v714_v27   ;;  %717 = vpow2.f32 %v349_v25  ;;  %v381_v23 = vsel %vm359_vm1, 1.0, %v365_v19 }
  0x9e   : > { %719 = vpow2.f32 %v335_v33 }
  0x9f   : > { %v307_v30 = vpop.f32.mrf.mxu2  ;;  %v317_v31 = vpop.f32.mrf.mxu3 }
  0xa0   : > { %v290_v32 = vpop.f32.mrf.mxu0  ;;  %v836_v39 = vadd.f32 %v805_v11, %v307_v30  ;;  %v300_v43 = vpop.f32.mrf.mxu1  ;;  %v868_v6 = vadd.f32 %v805_v11, %v317_v31  ;;  %v360_v30 = vmax.f32 %v808_v14, 0.0  ;;  %v361_v31 = vmax.f32 %v827_v29, 0.0 }
  0xa1   : > { %v831_v34 = vadd.f32 %v805_v11, %v290_v32  ;;  %v844_v49 = vadd.f32 %v805_v11, %v300_v43 }
  0xa2   : > { %v716_v35 = vpop.eup %715  ;;  %v343_v45 = vmul.f32 1.442695, %v836_v39  ;;  %v351_v8 = vmul.f32 1.442695, %v868_v6  ;;  %v376_v33 = vsel %vm359_vm1, 1.0, %v360_v30  ;;  %v369_v14 = vmax.f32 %v836_v39, 0.0 }
  0xa3   : > { %v329_v37 = vmul.f32 1.442695, %v831_v34  ;;  %v718_v38 = vpop.eup %717  ;;  %v337_v52 = vmul.f32 1.442695, %v844_v49  ;;  %v373_v19 = vmax.f32 %v868_v6, 0.0 }
  0xa4   : > { %454 = vperm.xlu0 %707, %v718_v38   ;;  %v720_v44 = vpop.eup %719 }
  0xa5   : > { %721 = vpow2.f32 %v329_v37  ;;  %434 = vperm.xlu2 %708, %v716_v35   ;;  %v377_v35 = vsel %vm359_vm1, 1.0, %v361_v31 }
  0xa6   : > { %723 = vpow2.f32 %v327_v36 }
  0xa7   : > { %v310_v40 = vpop.f32.mrf.mxu2  ;;  %v320_v41 = vpop.f32.mrf.mxu3 }
  0xa8   : > { %v839_v42 = vadd.f32 %v805_v11, %v310_v40  ;;  %v292_v47 = vpop.f32.mrf.mxu0  ;;  %v302_v59 = vpop.f32.mrf.mxu1  ;;  %v856_v60 = vadd.f32 %v805_v11, %v320_v41 }
  0xa9   : > { %v847_v51 = vadd.f32 %v805_v11, %v292_v47  ;;  %v862_v63 = vadd.f32 %v805_v11, %v302_v59 }
  0xaa   : > { %v345_v46 = vmul.f32 1.442695, %v839_v42  ;;  %v353_v0 = vmul.f32 1.442695, %v856_v60  ;;  %v370_v40 = vmax.f32 %v839_v42, 0.0 }
  0xab   : > { %v722_v48 = vpop.eup %721  ;;  %v331_v55 = vmul.f32 1.442695, %v847_v51  ;;  %v339_v3 = vmul.f32 1.442695, %v862_v63 }
  0xac   : > { %v724_v50 = vpop.eup %723  ;;  %725 = vpow2.f32 %v345_v46  ;;  %404 = vperm.xlu1 %709, %v722_v48   ;;  %v386_v46 = vsel %vm359_vm1, 1.0, %v370_v40 }
  0xad   : > { %419 = vperm.xlu2 %708, %v720_v44   ;;  %399 = vperm.xlu0 %707, %v724_v50   ;;  %727 = vpow2.f32 %v343_v45  ;;  %v368_v44 = vmax.f32 %v816_v20, 0.0  ;;  %v385_v20 = vsel %vm359_vm1, 1.0, %v369_v14 }
  0xae   : > { %729 = vpow2.f32 %v337_v52 }
  0xaf   : > { %v312_v53 = vpop.f32.mrf.mxu2  ;;  %v322_v56 = vpop.f32.mrf.mxu3  ;;  %v384_v42 = vsel %vm359_vm1, 1.0, %v368_v44 }
  0xb0   : > { %v851_v54 = vadd.f32 %v805_v11, %v312_v53  ;;  %v859_v62 = vadd.f32 %v805_v11, %v322_v56  ;;  %v364_v11 = vmax.f32 %v811_v15, 0.0  ;;  %v363_v56 = vmax.f32 %v847_v51, 0.0 }
  0xb1   : > { %v374_v51 = vmax.f32 %v856_v60, 0.0 }
  0xb2   : > { %v726_v57 = vpop.eup %725  ;;  %v347_v58 = vmul.f32 1.442695, %v851_v54  ;;  %v355_v1 = vmul.f32 1.442695, %v859_v62  ;;  %v380_v21 = vsel %vm359_vm1, 1.0, %v364_v11  ;;  %v371_v41 = vmax.f32 %v851_v54, 0.0 }
  0xb3   : > { %v728_v61 = vpop.eup %727  ;;  %v379_v59 = vsel %vm359_vm1, 1.0, %v363_v56  ;;  %v372_v11 = vmax.f32 %v819_v22, 0.0 }
  0xb4   : > { %731 = vpow2.f32 %v347_v58  ;;  %444 = vperm.xlu1 %709, %v726_v57   ;;  %v730_v2 = vpop.eup %729  ;;  %v387_v45 = vsel %vm359_vm1, 1.0, %v371_v41 }
  0xb5   : > { %733 = vpow2.f32 %v331_v55  ;;  %439 = vperm.xlu0 %707, %v728_v61   ;;  %v362_v55 = vmax.f32 %v831_v34, 0.0  ;;  %v367_v34 = vmax.f32 %v862_v63, 0.0 }
  0xb6   : > { %735 = vpow2.f32 %v353_v0 }
  0xb7   : > { %737 = vpow2.f32 %v355_v1  ;;  %v378_v58 = vsel %vm359_vm1, 1.0, %v362_v55 }
  0xb8   : > { %739 = vpow2.f32 %v339_v3 }
  0xb9   : > { %741 = vpow2.f32 %v351_v8 }
  0xba   : > { %v732_v4 = vpop.eup %731 }
  0xbb   : > { %v734_v5 = vpop.eup %733  ;;  %449 = vperm.xlu2 %708, %v732_v4   ;;  %v366_v4 = vmax.f32 %v844_v49, 0.0  ;;  %v390_v49 = vsel %vm359_vm1, 1.0, %v374_v51 }
  0xbc   : > { %409 = vperm.xlu1 %709, %v734_v5   ;;  %v736_v7 = vpop.eup %735  ;;  %v375_v5 = vmax.f32 %v859_v62, 0.0 }
  0xbd   : > { %424 = vperm.xlu0 %707, %v730_v2   ;;  %v738_v9 = vpop.eup %737  ;;  %v382_v8 = vsel %vm359_vm1, 1.0, %v366_v4 }
  0xbe   : > { %v740_v10 = vpop.eup %739  ;;  %v391_v60 = vsel %vm359_vm1, 1.0, %v375_v5 }
  0xbf   : > { %v742_v12 = vpop.eup %741 }
  0xc3   : > { %464 = vperm.xlu2 %708, %v736_v7  }
  0xc4   : > { %429 = vperm.xlu1 %709, %v740_v10  }
  0xc5   : > { %469 = vperm.xlu0 %707, %v738_v9   ;;  %v383_v9 = vsel %vm359_vm1, 1.0, %v367_v34 }
  0xcc   : > { %459 = vperm.xlu1 %709, %v742_v12  }
  0xf7   : > { %v415_v13 = vpop.permute.xlu2 %414 }
  0xf8   : > { %v476_v25 = vmul.f32 %v415_v13, %v380_v21 }
  0xff   : > { %v435_v17 = vpop.permute.xlu2 %434 }
 0x100   : > { %v480_v52 = vmul.f32 %v435_v17, %v384_v42 }
 0x107   : > { %v420_v24 = vpop.permute.xlu2 %419 }
 0x108   : > { %v477_v26 = vmul.f32 %v420_v24, %v381_v23  ;;  %v388_v23 = vsel %vm359_vm1, 1.0, %v372_v11  ;;  %v389_v24 = vsel %vm359_vm1, 1.0, %v373_v19 }
 0x10a   : > { %v658_v15 = vpack.c.bf16 %v477_v26, %v476_v25 }
 0x10c   : > { %686 = vst [vmem:[%s885_s27 + $0x10] sm:$0xff] %v658_v15  }
 0x10e   : > { %v395_v27 = vpop.permute.xlu0 %394 }
 0x10f   : > { %v472_v37 = vmul.f32 %v395_v27, %v376_v33 }
 0x115   : > { %v450_v29 = vpop.permute.xlu2 %449 }
 0x116   : > { %v888_v28 = vpop.permute.xlu0 %454  ;;  %v483_v48 = vmul.f32 %v450_v29, %v387_v45 }
 0x117   : > { %v484_v26 = vmul.f32 %v888_v28, %v388_v23 }
 0x11d   : > { %v465_v7 = vpop.permute.xlu2 %464 }
 0x11e   : > { %v405_v32 = vpop.permute.xlu1 %404  ;;  %v486_v13 = vmul.f32 %v465_v7, %v390_v49 }
 0x11f   : > { %v400_v36 = vpop.permute.xlu0 %399  ;;  %v474_v0 = vmul.f32 %v405_v32, %v378_v58 }
 0x120   : > { %v473_v38 = vmul.f32 %v400_v36, %v377_v35 }
 0x122   : > { %v648_v43 = vpack.c.bf16 %v473_v38, %v472_v37 }
 0x124   : > { %649 = vst [vmem:[%s885_s27] sm:$0xff] %v648_v43  }
 0x126   : > { %v445_v47 = vpop.permute.xlu1 %444 }
 0x127   : > { %v482_v50 = vmul.f32 %v445_v47, %v386_v46  ;;  %v440_v39 = vpop.permute.xlu0 %439 }
 0x128   : > { %v481_v53 = vmul.f32 %v440_v39, %v385_v20 }
 0x129   : > { %v673_v54 = vpack.c.bf16 %v483_v48, %v482_v50 }
 0x12a   : > { %v668_v57 = vpack.c.bf16 %v481_v53, %v480_v52 }
 0x12b   : > { %689 = vst [vmem:[%s885_s27 + $0x28] sm:$0xff] %v673_v54  }
 0x12c   : > { %688 = vst [vmem:[%s885_s27 + $0x20] sm:$0xff] %v668_v57  }
 0x12e   : > { %v410_v61 = vpop.permute.xlu1 %409 }
 0x12f   : > { %v475_v1 = vmul.f32 %v410_v61, %v379_v59  ;;  %v425_v2 = vpop.permute.xlu0 %424 }
 0x130   : > { %v478_v12 = vmul.f32 %v425_v2, %v382_v8 }
 0x131   : > { %v653_v3 = vpack.c.bf16 %v475_v1, %v474_v0 }
 0x133   : > { %685 = vst [vmem:[%s885_s27 + $0x8] sm:$0xff] %v653_v3  }
 0x136   : > { %v430_v10 = vpop.permute.xlu1 %429 }
 0x137   : > { %v479_v63 = vmul.f32 %v430_v10, %v383_v9  ;;  %v470_v62 = vpop.permute.xlu0 %469 }
 0x138   : > { %v487_v16 = vmul.f32 %v470_v62, %v391_v60 }
 0x139   : > { %v663_v17 = vpack.c.bf16 %v479_v63, %v478_v12 }
 0x13a   : > { %v683_v21 = vpack.c.bf16 %v487_v16, %v486_v13 }
 0x13b   : > { %687 = vst [vmem:[%s885_s27 + $0x18] sm:$0xff] %v663_v17  }
 0x13c   : > { %691 = vst [vmem:[%s885_s27 + $0x38] sm:$0xff] %v683_v21  }
 0x13e   : > { %v460_v25 = vpop.permute.xlu1 %459 }
 0x13f   : > { %v485_v15 = vmul.f32 %v460_v25, %v389_v24 }
 0x141   : > { %v678_v27 = vpack.c.bf16 %v485_v15, %v484_v26 }
 0x143   : > { %690 = vst [vmem:[%s885_s27 + $0x30] sm:$0xff] %v678_v27  }
 0x144 PF: > { %s13_s12 = sadd.s32 1, %s749_s12  }
 0x145   : > { %p10_p4 = scmp.ge.s32.totalorder %s13_s12, 4  }
 0x147   :  { %12 = sbr.rel (!%p10_p4) target bundleno = 1 (0x1), region = 62 }

</bundles_post_ra>
